<compile_context>
chip_gen: v5e
topology: v5e:2x2
jax: 0.10.0
libtpu: 0.0.40
codegen_flags: <defaults>
</compile_context>

<pallas_src>
import functools

import jax
import jax.numpy as jnp
from jax.experimental import pallas as pl
from jax.experimental.pallas import tpu as pltpu


# --------------------------------------------------------------------------- small helpers


def _vmem_capacity_bytes():
    """Physical VMEM per TensorCore; falls back to the smallest generation (v7x, 64 MiB)."""
    try:
        return int(pltpu.get_tpu_info().vmem_capacity_bytes)
    except Exception:
        return 64 << 20


def _device_kind():
    try:
        return jax.devices()[0].device_kind.lower()
    except Exception:
        return ""


def _build_attn_proj(a, n_heads, d_head, concat_heads):
    """Block-diagonal (F, 2H[+H]) matrix:  h @ proj -> [src logits | dst logits | (means)]."""
    f_dim = n_heads * d_head
    ncols = (2 if concat_heads else 3) * n_heads
    proj = jnp.zeros((f_dim, ncols), jnp.float32)
    for h in range(n_heads):
        rows = slice(h * d_head, (h + 1) * d_head)
        proj = proj.at[rows, h].set(a[h, :d_head])
        proj = proj.at[rows, n_heads + h].set(a[h, d_head:2 * d_head])
        if not concat_heads:
            proj = proj.at[rows, 2 * n_heads + h].set(1.0 / d_head)
    return proj


def _pick_tile(total, step, cap, fits):
    """Largest tile (multiple of `step`, divides `total`, <= cap) whose VMEM estimate fits.
    A tile equal to `total` (full extent) is always layout-legal and considered too."""
    cands = [t for t in range(step, min(total, cap) + 1, step) if total % t == 0]
    if total <= cap:
        cands.append(total)
    fit = [t for t in cands if fits(t)]
    if fit:
        return max(fit)
    # Nothing fits the soft budget: best effort, the explicit vmem_limit adds headroom.
    return min(cands) if cands else total


# --------------------------------------------------------------- pass 1: flattened projection


def _proj_kernel(x_ref, w_ref, b_ref, o_ref):
    # bf16 operands -> MXU, f32 accumulation.
    o_ref[...] = (jnp.dot(x_ref[...], w_ref[...], preferred_element_type=jnp.float32)
                  + b_ref[...])


def _projection(x_flat, w_ext, b_ext, vmem_cap):
    m, d_in = x_flat.shape
    fext = w_ext.shape[1]
    budget = vmem_cap * 3 // 4

    def est(t):
        return (2 * t * d_in * 2         # x tiles (bf16, double-buffered)
                + 2 * t * fext * 4       # output tiles (f32)
                + 2 * d_in * fext * 2    # weights (bf16)
                + 2 * fext * 4)          # bias row

    tile = _pick_tile(m, 8, 1024, lambda t: est(t) <= budget)
    vmem_limit = int(min(vmem_cap * 7 // 8, max(2 * est(tile), 48 << 20)))

    return pl.pallas_call(
        _proj_kernel,
        out_shape=jax.ShapeDtypeStruct((m, fext), jnp.float32),
        grid=(m // tile,),
        in_specs=[
            pl.BlockSpec((tile, d_in), lambda i: (i, 0)),
            pl.BlockSpec((d_in, fext), lambda i: (0, 0)),
            pl.BlockSpec((1, fext), lambda i: (0, 0)),
        ],
        out_specs=pl.BlockSpec((tile, fext), lambda i: (i, 0)),
        compiler_params=pltpu.CompilerParams(
            dimension_semantics=("parallel",),
            vmem_limit_bytes=vmem_limit),
    )(x_flat, w_ext, b_ext)


# --------------------------------------------------------------------- pass 2: attention


def _attn_kernel(adj_ref, src_ref, dstT_ref, val_ref, out_ref, *,
                 n_heads, d_head, alpha, concat_heads, out_dim, exp_dtype):
    """One (tm, N) row block of one batch element, all heads.

    adj_ref  (tm, N)       int8  adjacency tile (streamed)
    src_ref  (tm, H)       f32   per-row src logits
    dstT_ref (H, N)        f32   per-column dst logits (pre-transposed in the wrapper)
    val_ref  (N, F)  bf16  projected features          (concat_heads=True)
             (H, N)  f32   per-head feature means      (concat_heads=False)
    out_ref  (tm, out_pad) f32   lane-dense output slab (padding sliced off in the wrapper)
    """
    adj_nz = adj_ref[...] != 0          # one (tm, N) mask for all heads (bool, not f32)
    src = src_ref[...]                  # (tm, H) f32
    tm = out_ref.shape[0]
    out_pad = out_ref.shape[-1]

    for hi in range(n_heads):           # static, small head count -> unrolled
        e = src[:, hi:hi + 1] + dstT_ref[hi:hi + 1, :]            # (tm, N) f32
        e = jnp.where(e >= 0, e, alpha * e)                       # LeakyReLU
        # Mask fused into the select (no additive -1e30 temporary).  -1e30 instead of -inf
        # so an edgeless row degrades to uniform weights rather than NaN (self-loops make
        # this unreachable in practice).
        e = jnp.where(adj_nz, e, jnp.float32(-1e30))
        m = jnp.max(e, axis=-1, keepdims=True)
        em = e - m
        if exp_dtype == jnp.float32:                              # v5e: no bf16 EUP/VPU
            p = jnp.exp(em)
        else:                                                     # v6e/v7x: bf16 exp ~2x EUP
            p = jnp.exp(em.astype(exp_dtype)).astype(jnp.float32)

        if concat_heads:
            attn = p * pl.reciprocal(jnp.sum(p, axis=-1, keepdims=True), approx=True)
            vals = val_ref[:, hi * d_head:(hi + 1) * d_head]      # (N, D) bf16
            piece = jnp.dot(attn.astype(jnp.bfloat16), vals,      # bf16 MXU, f32 accumulate
                            preferred_element_type=jnp.float32)   # (tm, D)
            # Write each head's result at its column slice of the output slab (no
            # jnp.concatenate of sub-128-lane pieces -> no XLU lane shifts).
            out_ref[:, hi * d_head:(hi + 1) * d_head] = piece.astype(out_ref.dtype)
        else:
            # Head-mean folded into the softmax pass (no 1-lane-wide matmul; means stay f32):
            #   out_i = sum_j p_ij * mean_j / sum_j p_ij
            num = jnp.sum(p * val_ref[hi:hi + 1, :], axis=-1, keepdims=True)   # (tm, 1)
            den = jnp.sum(p, axis=-1, keepdims=True)
            out_ref[:, hi:hi + 1] = (num * pl.reciprocal(den, approx=True)
                                     ).astype(out_ref.dtype)

    if out_pad > out_dim:   # deterministic padding lanes (sliced off in the wrapper)
        out_ref[:, out_dim:] = jnp.zeros((tm, out_pad - out_dim), out_ref.dtype)


# ------------------------------------------------------------------------------ wrapper


def gat_layer(x, adj_hat, w, bias, a, *, n_heads=1, concat_heads=True, alpha=0.2,
              row_tile=None):
    """Forward pass of the torch GATLayer.  `w` is the projection weight pre-transposed to
    (d_in, d_out * n_heads), `bias` is (d_out * n_heads,), `a` is (n_heads, 2 * d_out)."""
    B, N, d_in = x.shape
    f_dim = w.shape[1]                      # d_out * n_heads
    d_out = a.shape[1] // 2                 # the module's d_out argument
    d_head = d_out // n_heads if concat_heads else d_out
    # TODO(synk): like the torch module's .view, only self-consistent for n_heads == 1
    #             (concat_heads=True) or concat_heads=False; same constraint kept here.
    assert f_dim == n_heads * d_head
    out_dim = n_heads * d_head if concat_heads else n_heads
    out_pad = -(-out_dim // 128) * 128      # lane-dense output store; sliced off below

    vmem_cap = _vmem_capacity_bytes()
    kind = _device_kind()
    use_bf16_exp = any(t in kind for t in ("v6", "v7", "tpu7"))       # not on v5e (no bf16 EUP)
    is_v5e = ("v5e" in kind) or ("v5 lite" in kind) or ("v5lite" in kind)

    # ---- pass 1: flattened projection + all-head logits (one MXU matmul, M = B*N) ----
    attn_proj = _build_attn_proj(a.astype(jnp.float32), n_heads, d_head, concat_heads)
    w_f32 = w.astype(jnp.float32)
    b_f32 = bias.astype(jnp.float32)
    if concat_heads:
        # [h | src | dst] columns; h is needed as aggregation values.
        w_ext = jnp.concatenate([w_f32, w_f32 @ attn_proj], axis=1)
        b_ext = jnp.concatenate([b_f32, b_f32 @ attn_proj])
        base = f_dim
    else:
        # Only [src | dst | mean] columns are needed downstream; skip materializing h.
        w_ext = w_f32 @ attn_proj
        b_ext = b_f32 @ attn_proj
        base = 0

    h_all = _projection(x.reshape(B * N, d_in).astype(jnp.bfloat16),
                        w_ext.astype(jnp.bfloat16),
                        b_ext.reshape(1, -1).astype(jnp.float32),
                        vmem_cap)
    h_all = h_all.reshape(B, N, -1)
    src = h_all[..., base:base + n_heads]                                       # (B, N, H) f32
    dstT = jnp.swapaxes(h_all[..., base + n_heads:base + 2 * n_heads], -1, -2)  # (B, H, N) f32
    if concat_heads:
        vals = h_all[..., :f_dim].astype(jnp.bfloat16)                          # (B, N, F) bf16
        val_block = (pl.Squeezed(), N, f_dim)
    else:
        vals = jnp.swapaxes(h_all[..., base + 2 * n_heads:], -1, -2)            # (B, H, N) f32
        val_block = (pl.Squeezed(), n_heads, N)

    adj_i8 = (adj_hat != 0).astype(jnp.int8)        # 4x less adjacency DMA than f32

    # ---- row tile derived from N and the per-generation VMEM budget ----
    budget = vmem_cap * 3 // 4

    def attn_est(tm, adj_bufs=2):
        est = adj_bufs * tm * N                                       # int8 adjacency tiles
        est += 2 * tm * n_heads * 4                                   # src tiles (f32)
        est += 2 * n_heads * N * 4                                    # dstT block (f32)
        est += (2 * N * f_dim * 2) if concat_heads else (2 * n_heads * N * 4)   # values
        est += 2 * tm * out_pad * 4                                   # output blocks (f32)
        est += 4 * tm * N * 4                                         # live (tm, N) f32 temps
        return est

    if row_tile is None:
        tm = _pick_tile(N, 32, 1024, lambda t: attn_est(t) <= budget)
    else:
        tm = row_tile
    assert N % tm == 0

    # v5e only: the adjacency stream is the single remaining per-step DMA; deepen its
    # pipeline when the VMEM budget allows (weakest HBM of the three generations).
    adj_bufs = 3 if (is_v5e and attn_est(tm, 3) <= budget) else 2
    adj_idx = lambda b, i: (b, i, 0)
    adj_spec = pl.BlockSpec((pl.Squeezed(), tm, N), adj_idx)
    if adj_bufs == 3:
        try:
            adj_spec = pl.BlockSpec((pl.Squeezed(), tm, N), adj_idx,
                                    pipeline_mode=pl.Buffered(3))
        except TypeError:
            adj_bufs = 2

    vmem_limit = int(min(vmem_cap * 7 // 8, max(2 * attn_est(tm, adj_bufs), 48 << 20)))

    kernel = functools.partial(
        _attn_kernel, n_heads=n_heads, d_head=d_head, alpha=alpha,
        concat_heads=concat_heads, out_dim=out_dim,
        exp_dtype=jnp.bfloat16 if use_bf16_exp else jnp.float32)

    out_padded = pl.pallas_call(
        kernel,
        out_shape=jax.ShapeDtypeStruct((B, N, out_pad), jnp.float32),
        grid=(B, N // tm),
        in_specs=[
            adj_spec,
            pl.BlockSpec((pl.Squeezed(), tm, n_heads), lambda b, i: (b, i, 0)),
            pl.BlockSpec((pl.Squeezed(), n_heads, N), lambda b, i: (b, 0, 0)),
            pl.BlockSpec(val_block, lambda b, i: (b, 0, 0)),
        ],
        out_specs=pl.BlockSpec((pl.Squeezed(), tm, out_pad), lambda b, i: (b, i, 0)),
        compiler_params=pltpu.CompilerParams(
            # No cross-iteration state anymore -> both axes parallel; with B >= 2 both
            # v7x TensorCores get work (no-op on single-core v5e/v6e).
            dimension_semantics=("parallel", "parallel"),
            vmem_limit_bytes=vmem_limit),
    )(adj_i8, src, dstT, vals)

    return out_padded[:, :, :out_dim]


# ------------------------------------------------------------------------- verification


def gat_reference(x, adj_hat, w, bias, a, *, n_heads=1, concat_heads=True, alpha=0.2):
    """Pure-JAX f32 replica of the torch forward (verification)."""
    B, N, _ = x.shape
    d_out = a.shape[1] // 2
    d_head = d_out // n_heads if concat_heads else d_out
    h = x @ w + bias
    h = h.reshape(B, N, n_heads, d_head)
    e = (jnp.einsum('bihd,hd->bih', h, a[:, :d_head])[:, :, None, :]
         + jnp.einsum('bjhd,hd->bjh', h, a[:, d_head:2 * d_head])[:, None, :, :])
    e = jnp.where(e >= 0, e, alpha * e)
    e = jnp.where(adj_hat[..., None] == 0, -jnp.inf, e)
    attn = jax.nn.softmax(e, axis=-2)
    res = jnp.einsum('bmnh,bnhd->bmhd', attn, h)
    if concat_heads:
        return res.reshape(B, N, n_heads * d_head)
    return res.mean(axis=-1)


def init_params(key, d_in, d_out, n_heads):
    """Xavier-uniform-style init matching the module's shapes (weight stored transposed)."""
    kw, kb, ka = jax.random.split(key, 3)
    f_dim = d_out * n_heads
    gain = 1.414
    w_bound = gain * (6.0 / (d_in + f_dim)) ** 0.5
    w = jax.random.uniform(kw, (d_in, f_dim), jnp.float32, -w_bound, w_bound)
    b_bound = 1.0 / (d_in ** 0.5)
    bias = jax.random.uniform(kb, (f_dim,), jnp.float32, -b_bound, b_bound)
    a_bound = gain * (6.0 / (n_heads + 2 * d_out)) ** 0.5
    a = jax.random.uniform(ka, (n_heads, 2 * d_out), jnp.float32, -a_bound, a_bound)
    return w, bias, a


if __name__ == "__main__":
    key = jax.random.PRNGKey(0)
    kx, kadj, kp1, kp2 = jax.random.split(key, 4)

    B, N, D_IN, D_OUT, ALPHA = 2, 8, 8, 16, 0.2

    x = jax.random.normal(kx, (B, N, D_IN), jnp.float32)
    adj = (jax.random.uniform(kadj, (B, N, N)) > 0.5).astype(jnp.float32)
    adj = jnp.maximum(jnp.maximum(adj, jnp.swapaxes(adj, -1, -2)),
                      jnp.eye(N, dtype=jnp.float32)[None])        # symmetric + self-loops

    # Config 1: module defaults (n_heads=1, concat_heads=True).
    w1, b1, a1 = init_params(kp1, D_IN, D_OUT, n_heads=1)
    out1 = jax.block_until_ready(
        gat_layer(x, adj, w1, b1, a1, n_heads=1, concat_heads=True, alpha=ALPHA))
    ref1 = gat_reference(x, adj, w1, b1, a1, n_heads=1, concat_heads=True, alpha=ALPHA)
    assert out1.shape == ref1.shape, (out1.shape, ref1.shape)
    # bf16 MXU operands + bf16 exp (v6e/v7x) + approx reciprocal -> compare vs pure-f32 ref.
    assert jnp.allclose(out1, ref1, rtol=4e-2, atol=4e-2), \
        float(jnp.max(jnp.abs(out1 - ref1)))

    # Config 2: multi-head with head-averaged output (concat_heads=False).
    w2, b2, a2 = init_params(kp2, D_IN, D_OUT, n_heads=2)
    out2 = jax.block_until_ready(
        gat_layer(x, adj, w2, b2, a2, n_heads=2, concat_heads=False, alpha=ALPHA))
    ref2 = gat_reference(x, adj, w2, b2, a2, n_heads=2, concat_heads=False, alpha=ALPHA)
    assert out2.shape == ref2.shape, (out2.shape, ref2.shape)
    assert jnp.allclose(out2, ref2, rtol=4e-2, atol=4e-2), \
        float(jnp.max(jnp.abs(out2 - ref2)))

    print("KERNEL_OK")
</pallas_src>

<mosaic_0001>
module attributes {stable_mosaic.version = 11 : i64} {
  func.func @_proj_kernel(%arg0: i32, %arg1: memref<16x8xbf16, #tpu.memory_space<vmem>>, %arg2: memref<8x18xbf16, #tpu.memory_space<vmem>>, %arg3: memref<1x18xf32, #tpu.memory_space<vmem>>, %arg4: memref<16x18xf32, #tpu.memory_space<vmem>>) attributes {dimension_semantics = [#tpu.dimension_semantics<parallel>], iteration_bounds = array<i64: 1>, scalar_prefetch = 0 : i64, scratch_operands = 0 : i64, tpu.core_type = #tpu.core_type<tc>, window_params = [{transform_indices = @transform_0, window_bounds = array<i64: 16, 8>}, {pipeline_mode = #tpu.pipeline_mode<synchronous>, transform_indices = @transform_1, window_bounds = array<i64: 8, 18>}, {pipeline_mode = #tpu.pipeline_mode<synchronous>, transform_indices = @transform_2, window_bounds = array<i64: 1, 18>}, {transform_indices = @transform_3, window_bounds = array<i64: 16, 18>}]} {
    %c0 = arith.constant 0 : index
    %c0_0 = arith.constant 0 : index
    %0 = vector.load %arg1[%c0, %c0_0] : memref<16x8xbf16, #tpu.memory_space<vmem>>, vector<16x8xbf16>
    %c0_1 = arith.constant 0 : index
    %c0_2 = arith.constant 0 : index
    %1 = vector.load %arg2[%c0_1, %c0_2] : memref<8x18xbf16, #tpu.memory_space<vmem>>, vector<8x18xbf16>
    %cst = arith.constant dense<0.000000e+00> : vector<16x18xf32>
    %2 = tpu.matmul %0, %1, %cst {dimension_numbers = #tpu.dot_dimension_numbers<[1], [0], [0], [1], [0, 0, 1, 1], [], []>} : vector<16x8xbf16>, vector<8x18xbf16>, vector<16x18xf32> -> vector<16x18xf32>
    %c0_3 = arith.constant 0 : index
    %c0_4 = arith.constant 0 : index
    %3 = vector.load %arg3[%c0_3, %c0_4] : memref<1x18xf32, #tpu.memory_space<vmem>>, vector<1x18xf32>
    %4 = vector.broadcast %3 : vector<1x18xf32> to vector<16x18xf32>
    %5 = arith.addf %2, %4 : vector<16x18xf32>
    %c0_5 = arith.constant 0 : index
    %c0_6 = arith.constant 0 : index
    %6 = vector.load %arg4[%c0_5, %c0_6] : memref<16x18xf32, #tpu.memory_space<vmem>>, vector<16x18xf32>
    tpu.vector_store %arg4[%c0_5, %c0_6], %5 {strides = array<i32>} : memref<16x18xf32, #tpu.memory_space<vmem>>, vector<16x18xf32>,
    return
  }
  func.func @transform_0(%arg0: i32) -> (i32, i32) {
    %c0_i32 = arith.constant 0 : i32
    %c0_i32_0 = arith.constant 0 : i32
    return %arg0, %c0_i32 : i32, i32
  }
  func.func @transform_1(%arg0: i32) -> (i32, i32) {
    %c0_i32 = arith.constant 0 : i32
    %c0_i32_0 = arith.constant 0 : i32
    %c0_i32_1 = arith.constant 0 : i32
    return %c0_i32, %c0_i32_0 : i32, i32
  }
  func.func @transform_2(%arg0: i32) -> (i32, i32) {
    %c0_i32 = arith.constant 0 : i32
    %c0_i32_0 = arith.constant 0 : i32
    %c0_i32_1 = arith.constant 0 : i32
    return %c0_i32, %c0_i32_0 : i32, i32
  }
  func.func @transform_3(%arg0: i32) -> (i32, i32) {
    %c0_i32 = arith.constant 0 : i32
    %c0_i32_0 = arith.constant 0 : i32
    return %arg0, %c0_i32 : i32, i32
  }
}

</mosaic_0001>

<bundles_post_ra>
// kernel: tpu_custom_call.1
= control target key start
LH: loop header
LB: loop body
LE: loop exit
PB: predicated region body
PF: predicated region fallthrough
CT: control target
= control target key end

     0   :  { %vm32_vm0 = vcmask 1043456   ;;  %vm28_vm1 = vcmask 64512   ;;  %s142_s0 = inlined_call_operand.vmem [shape: bf16[16,8], index: 0, kind: input, shape index: {}]   ;;  %s143_s1 = inlined_call_operand.vmem [shape: bf16[8,18], index: 1, kind: input, shape index: {}]   ;;  %s144_s2 = inlined_call_operand.vmem [shape: f32[1,18], index: 2, kind: input, shape index: {}]   ;;  %s145_s3 = inlined_call_operand.hbm [shape: f32[16,18], index: 3, kind: output, shape index: {}]  }
   0x1   :  { %v18_v0 = vld [vmem:[%s143_s1] sm:$0xf] }
   0x2   :  { %v34_v1 = vsel %vm32_vm0, %v18_v0, 0  ;;  %v76_v2 = vld [vmem:[%s142_s0] sm:$0xff] }
   0x3   :  { %43 = vmatpush.bf16.msra.mxu0 %v34_v1 }
   0x4   :  { %8 = vsyncpa [#allocation3], 0  ;;  %v80_v3 = vld [vmem:[%s144_s2] ss:$0 sm:$0xff]  ;;  %vm50_vm2 = vcmask 146432   ;;  %s107_s18 = smov [#allocation2]  }
   0x5   :  { %s57_s1 = sshll.u32 %s107_s18, 4  ;;  %s59_s21 = sshll.u32 %s145_s3, 4  ;;  %s58_s1 = int_to_ptr.vmem [resolvable:$true] %s57_s1  ;;  %s60_s21 = int_to_ptr.hbm [resolvable:$true] %s59_s21 }
   0x6   :  { %75 = vmatmul.msk.bf16.vlgmr.msra.gmra.mxu0 %vm28_vm1, %v76_v2  ;;  %s108_s0 = smov 128   ;;  %s109_s22 = smov 8  }
  0x83   :  { %v45_v4 = vpop.f32.mrf.mxu0 }
  0x84   :  { %v46_v5 = vadd.f32 %v80_v3, %v45_v4 }
  0x86   :  { %51 = vst.msk [vmem:[#allocation2] sm:$0xff] %vm50_vm2, %v46_v5 }
  0x8b   :  { %v47_v6 = vpop.f32.mrf.mxu0 }
  0x8c   :  { %v48_v7 = vadd.f32 %v80_v3, %v47_v6 }
  0x8e   :  { %52 = vst.msk [vmem:[#allocation2 + $0x8] sm:$0xff] %vm50_vm2, %v48_v7 }
  0x8f   :  { %65 = dma.vmem_to_hbm [thread:$0]  %s58_s1, 256, %s60_s21, [#allocation3], %s108_s0, %s108_s0, %s109_s22  }
  0x90   :  { %105 = dma.done.wait [#allocation3], 256  }
  0x91   :  { %106 = vsyncadd [#allocation3], 4294967040 }
  0x92   :  { %70 = vsyncpa [#allocation3], 1 }

</bundles_post_ra>
